<compile_context>
chip_gen: v5e
topology: v5e:2x2
jax: 0.10.0
libtpu: 0.0.40
codegen_flags: <defaults>
</compile_context>

<pallas_src>
import functools

import jax
import jax.numpy as jnp
import numpy as np
from jax.experimental import pallas as pl
from jax.experimental.pallas import tpu as pltpu


def _fused_se_kernel(*refs, n_scales, splits):
    """refs = (feat_0..feat_{n-1}, pos_0..pos_{n-1}, out_0..out_{n-1}).

    feat_i : [bb, Cf_i*H_i*W_i]      lane-dense feature slab (batch block)
    pos_i  : [1,  Cse*H_i*W_i]       precomputed (row_emb + col_emb) slab
    out_i  : [bb, (Cf_i+Cse)*H_i*W_i]
    """
    feat_refs = refs[:n_scales]
    pos_refs = refs[n_scales:2 * n_scales]
    out_refs = refs[2 * n_scales:]

    for f_ref, p_ref, o_ref, split in zip(feat_refs, pos_refs, out_refs, splits):
        bb, total = o_ref.shape
        pos_len = total - split
        # Feature passthrough: pure copy; `split` is a multiple of 128 for the
        # module's shapes, so the store stays lane-dense and unmasked.
        o_ref[:, :split] = f_ref[...]
        # Positional slab: batch-invariant broadcast copy (the row+col add was
        # hoisted to init time, so no VPU math remains in the kernel).
        o_ref[:, split:] = jnp.broadcast_to(
            p_ref[...], (bb, pos_len)).astype(o_ref.dtype)


def fused_add_embint_se(feats, pos_slabs, *, block_b=None):
    """One fused pallas_call over all scales.

    feats     : list of [B, Cf_i, H_i, W_i]
    pos_slabs : list of [Cse, H_i, W_i]  (precomputed row_emb[h] + col_emb[w])
    returns   : list of [B, Cf_i + Cse, H_i, W_i]
    """
    assert len(feats) == len(pos_slabs) and len(feats) > 0
    n = len(feats)
    B = feats[0].shape[0]
    if block_b is None:
        # Tiny scales: one block over the whole batch -> single grid step.
        # For real shapes on v7x set block_b so the "parallel" grid has >= 2
        # steps (2 TCs) and double-buffered blocks fit 64 MiB VMEM.
        block_b = B

    feat_flats, pos_flats, out_shapes, splits = [], [], [], []
    for f, p in zip(feats, pos_slabs):
        b_, Cf, H, W = f.shape
        assert b_ == B
        Cse = p.shape[0]
        HW = H * W
        feat_flats.append(f.reshape(B, Cf * HW))                  # free reshape
        pos_flats.append(p.reshape(1, Cse * HW).astype(f.dtype))  # param-only slab
        out_shapes.append(jax.ShapeDtypeStruct((B, (Cf + Cse) * HW), f.dtype))
        splits.append(Cf * HW)

    grid = (pl.cdiv(B, block_b),)
    in_specs = (
        [pl.BlockSpec((block_b, f.shape[1]), lambda b: (b, 0)) for f in feat_flats]
        + [pl.BlockSpec((1, p.shape[1]), lambda b: (0, 0)) for p in pos_flats])
    out_specs = tuple(
        pl.BlockSpec((block_b, s.shape[1]), lambda b: (b, 0)) for s in out_shapes)

    bytes_accessed = int(
        sum(int(x.size) * x.dtype.itemsize for x in feat_flats + pos_flats)
        + sum(int(np.prod(s.shape)) * np.dtype(s.dtype).itemsize
              for s in out_shapes))

    outs_flat = pl.pallas_call(
        functools.partial(_fused_se_kernel, n_scales=n, splits=tuple(splits)),
        out_shape=tuple(out_shapes),
        grid=grid,
        in_specs=in_specs,
        out_specs=out_specs,
        compiler_params=pltpu.CompilerParams(
            dimension_semantics=("parallel",)),
        cost_estimate=pl.CostEstimate(
            flops=0, transcendentals=0, bytes_accessed=bytes_accessed),
    )(*feat_flats, *pos_flats)

    outs = []
    for o, f, p in zip(outs_flat, feats, pos_slabs):
        _, Cf, H, W = f.shape
        Cse = p.shape[0]
        outs.append(o.reshape(B, Cf + Cse, H, W))
    return outs


class TemporalSEDinoLikeMK1:
    """JAX/Pallas port of temporal_se_dino_like_mk1."""

    def __init__(self, scales, num_se_channels, key):
        assert isinstance(num_se_channels, int)
        self.params = []
        self.pos_slabs = []
        for cid, sc in enumerate(scales):
            _, H, W = sc  # scales[cid] = (channels, H, W); module uses [1], [2]
            krow, kcol = jax.random.split(jax.random.fold_in(key, cid))
            # nn.Embedding default init ~ N(0, 1); stored channel-major.
            row_emb_t = jax.random.normal(krow, (num_se_channels, H), jnp.float32)
            col_emb_t = jax.random.normal(kcol, (num_se_channels, W), jnp.float32)
            self.params.append((row_emb_t, col_emb_t))
            # Hoisted pos slab (depends only on params -> computed once here).
            self.pos_slabs.append(row_emb_t[:, :, None] + col_emb_t[:, None, :])

    def __call__(self, feats):
        return fused_add_embint_se(feats, self.pos_slabs)


def _reference(feats, params):
    outs = []
    for (row_t, col_t), f in zip(params, feats):
        pos = row_t[:, :, None] + col_t[:, None, :]               # [Cse, H, W]
        pos = jnp.broadcast_to(pos[None], (f.shape[0],) + pos.shape)
        outs.append(jnp.concatenate([f, pos.astype(f.dtype)], axis=1))
    return outs


if __name__ == "__main__":
    key = jax.random.PRNGKey(0)
    B = 2
    num_se_channels = 8
    scales = [(4, 16, 16), (8, 8, 8)]   # (channels, H, W) per scale

    kf, kp = jax.random.split(key)
    feats = []
    for cid, (C, H, W) in enumerate(scales):
        feats.append(jax.random.normal(jax.random.fold_in(kf, cid),
                                       (B, C, H, W), jnp.float32))

    mod = TemporalSEDinoLikeMK1(scales, num_se_channels, kp)
    outs = mod(feats)
    outs = [jax.block_until_ready(o) for o in outs]

    refs = _reference(feats, mod.params)
    for o, r in zip(outs, refs):
        assert o.shape == r.shape, (o.shape, r.shape)
        np.testing.assert_allclose(np.asarray(o), np.asarray(r),
                                   rtol=1e-6, atol=1e-6)

    print("KERNEL_OK")
</pallas_src>

<mosaic_0001>
module attributes {stable_mosaic.version = 11 : i64} {
  func.func @_fused_se_kernel(%arg0: i32, %arg1: memref<2x1024xf32, #tpu.memory_space<vmem>>, %arg2: memref<2x512xf32, #tpu.memory_space<vmem>>, %arg3: memref<1x2048xf32, #tpu.memory_space<vmem>>, %arg4: memref<1x512xf32, #tpu.memory_space<vmem>>, %arg5: memref<2x3072xf32, #tpu.memory_space<vmem>>, %arg6: memref<2x1024xf32, #tpu.memory_space<vmem>>) attributes {dimension_semantics = [#tpu.dimension_semantics<parallel>], iteration_bounds = array<i64: 1>, scalar_prefetch = 0 : i64, scratch_operands = 0 : i64, tpu.core_type = #tpu.core_type<tc>, window_params = [{transform_indices = @transform_0, window_bounds = array<i64: 2, 1024>}, {transform_indices = @transform_1, window_bounds = array<i64: 2, 512>}, {pipeline_mode = #tpu.pipeline_mode<synchronous>, transform_indices = @transform_2, window_bounds = array<i64: 1, 2048>}, {pipeline_mode = #tpu.pipeline_mode<synchronous>, transform_indices = @transform_3, window_bounds = array<i64: 1, 512>}, {transform_indices = @transform_4, window_bounds = array<i64: 2, 3072>}, {transform_indices = @transform_5, window_bounds = array<i64: 2, 1024>}]} {
    %c0 = arith.constant 0 : index
    %c0_0 = arith.constant 0 : index
    %0 = vector.load %arg1[%c0, %c0_0] : memref<2x1024xf32, #tpu.memory_space<vmem>>, vector<2x1024xf32>
    %c0_1 = arith.constant 0 : index
    %c0_2 = arith.constant 0 : index
    %1 = vector.load %arg5[%c0_1, %c0_2] : memref<2x3072xf32, #tpu.memory_space<vmem>>, vector<2x1024xf32>
    tpu.vector_store %arg5[%c0_1, %c0_2], %0 {strides = array<i32>} : memref<2x3072xf32, #tpu.memory_space<vmem>>, vector<2x1024xf32>,
    %c0_3 = arith.constant 0 : index
    %c0_4 = arith.constant 0 : index
    %2 = vector.load %arg3[%c0_3, %c0_4] : memref<1x2048xf32, #tpu.memory_space<vmem>>, vector<1x2048xf32>
    %3 = vector.shape_cast %2 : vector<1x2048xf32> to vector<1x2048xf32>
    %4 = vector.broadcast %3 : vector<1x2048xf32> to vector<2x2048xf32>
    %c0_5 = arith.constant 0 : index
    %c1024 = arith.constant 1024 : index
    %5 = vector.load %arg5[%c0_5, %c1024] : memref<2x3072xf32, #tpu.memory_space<vmem>>, vector<2x2048xf32>
    tpu.vector_store %arg5[%c0_5, %c1024], %4 {strides = array<i32>} : memref<2x3072xf32, #tpu.memory_space<vmem>>, vector<2x2048xf32>,
    %c0_6 = arith.constant 0 : index
    %c0_7 = arith.constant 0 : index
    %6 = vector.load %arg2[%c0_6, %c0_7] : memref<2x512xf32, #tpu.memory_space<vmem>>, vector<2x512xf32>
    %c0_8 = arith.constant 0 : index
    %c0_9 = arith.constant 0 : index
    %7 = vector.load %arg6[%c0_8, %c0_9] : memref<2x1024xf32, #tpu.memory_space<vmem>>, vector<2x512xf32>
    tpu.vector_store %arg6[%c0_8, %c0_9], %6 {strides = array<i32>} : memref<2x1024xf32, #tpu.memory_space<vmem>>, vector<2x512xf32>,
    %c0_10 = arith.constant 0 : index
    %c0_11 = arith.constant 0 : index
    %8 = vector.load %arg4[%c0_10, %c0_11] : memref<1x512xf32, #tpu.memory_space<vmem>>, vector<1x512xf32>
    %9 = vector.shape_cast %8 : vector<1x512xf32> to vector<1x512xf32>
    %10 = vector.broadcast %9 : vector<1x512xf32> to vector<2x512xf32>
    %c0_12 = arith.constant 0 : index
    %c512 = arith.constant 512 : index
    %11 = vector.load %arg6[%c0_12, %c512] : memref<2x1024xf32, #tpu.memory_space<vmem>>, vector<2x512xf32>
    tpu.vector_store %arg6[%c0_12, %c512], %10 {strides = array<i32>} : memref<2x1024xf32, #tpu.memory_space<vmem>>, vector<2x512xf32>,
    return
  }
  func.func @transform_0(%arg0: i32) -> (i32, i32) {
    %c0_i32 = arith.constant 0 : i32
    %c0_i32_0 = arith.constant 0 : i32
    return %arg0, %c0_i32 : i32, i32
  }
  func.func @transform_1(%arg0: i32) -> (i32, i32) {
    %c0_i32 = arith.constant 0 : i32
    %c0_i32_0 = arith.constant 0 : i32
    return %arg0, %c0_i32 : i32, i32
  }
  func.func @transform_2(%arg0: i32) -> (i32, i32) {
    %c0_i32 = arith.constant 0 : i32
    %c0_i32_0 = arith.constant 0 : i32
    %c0_i32_1 = arith.constant 0 : i32
    return %c0_i32, %c0_i32_0 : i32, i32
  }
  func.func @transform_3(%arg0: i32) -> (i32, i32) {
    %c0_i32 = arith.constant 0 : i32
    %c0_i32_0 = arith.constant 0 : i32
    %c0_i32_1 = arith.constant 0 : i32
    return %c0_i32, %c0_i32_0 : i32, i32
  }
  func.func @transform_4(%arg0: i32) -> (i32, i32) {
    %c0_i32 = arith.constant 0 : i32
    %c0_i32_0 = arith.constant 0 : i32
    return %arg0, %c0_i32 : i32, i32
  }
  func.func @transform_5(%arg0: i32) -> (i32, i32) {
    %c0_i32 = arith.constant 0 : i32
    %c0_i32_0 = arith.constant 0 : i32
    return %arg0, %c0_i32 : i32, i32
  }
}

</mosaic_0001>

<bundles_post_ra>
// kernel: tpu_custom_call.1
= control target key start
LH: loop header
LB: loop body
LE: loop exit
PB: predicated region body
PF: predicated region fallthrough
CT: control target
= control target key end

     0   :  { %11 = vsyncpa [#allocation3], 0  ;;  %s415_s0 = inlined_call_operand.hbm [shape: f32[2,1024], index: 0, kind: input, shape index: {}]   ;;  %s416_s1 = inlined_call_operand.hbm [shape: f32[2,512], index: 1, kind: input, shape index: {}]   ;;  %s417_s2 = inlined_call_operand.hbm [shape: f32[1,2048], index: 2, kind: input, shape index: {}]   ;;  %s418_s3 = inlined_call_operand.hbm [shape: f32[1,512], index: 3, kind: input, shape index: {}]   ;;  %s419_s4 = inlined_call_operand.hbm [shape: f32[2,3072], index: 4, kind: output, shape index: {0}]   ;;  %s420_s5 = inlined_call_operand.hbm [shape: f32[2,1024], index: 5, kind: output, shape index: {1}]  }
   0x1   :  { %12 = vsyncpa [#allocation6], 0 }
   0x2   :  { %13 = vsyncpa [#allocation9], 0 }
   0x3   :  { %14 = vsyncpa [#allocation4], 0  ;;  %s32_s20 = sshll.u32 %s416_s1, 4  ;;  %s33_s20 = int_to_ptr.hbm [resolvable:$true] %s32_s20 }
   0x4   :  { %15 = vsyncpa [#allocation12], 0  ;;  %s346_s21 = smov [#allocation5]   ;;  %s21_s25 = sshll.u32 %s415_s0, 4  ;;  %s22_s25 = int_to_ptr.hbm [resolvable:$true] %s21_s25 }
   0x5   :  { %s34_s22 = sshll.u32 %s346_s21, 4  ;;  %s347_s26 = smov [#allocation2]   ;;  %s35_s22 = int_to_ptr.vmem [resolvable:$true] %s34_s22 }
   0x6   :  { %37 = dma.hbm_to_vmem [thread:$0]  %s33_s20, 128, %s35_s22, [#allocation6]  }
   0x7   :  { %s23_s27 = sshll.u32 %s347_s26, 4  ;;  %s43_s30 = sshll.u32 %s417_s2, 4  ;;  %s24_s27 = int_to_ptr.vmem [resolvable:$true] %s23_s27  ;;  %s44_s30 = int_to_ptr.hbm [resolvable:$true] %s43_s30 }
   0x8   :  { %26 = dma.hbm_to_vmem [thread:$0]  %s22_s25, 256, %s24_s27, [#allocation3]  }
   0x9   :  { %s54_s7 = sshll.u32 %s418_s3, 4  ;;  %s348_s8 = smov [#allocation7]   ;;  %s55_s7 = int_to_ptr.hbm [resolvable:$true] %s54_s7 }
   0xa   :  { %s45_s9 = sshll.u32 %s348_s8, 4  ;;  %s349_s0 = smov [#allocation8]   ;;  %s46_s9 = int_to_ptr.vmem [resolvable:$true] %s45_s9 }
   0xb   :  { %48 = dma.hbm_to_vmem [thread:$0]  %s44_s30, 256, %s46_s9, [#allocation6]  }
   0xc   :  { %s56_s10 = sshll.u32 %s349_s0, 4  ;;  %s57_s10 = int_to_ptr.vmem [resolvable:$true] %s56_s10 }
   0xd   :  { %59 = dma.hbm_to_vmem [thread:$0]  %s55_s7, 64, %s57_s10, [#allocation9]  }
   0xe   :  { %336 = dma.done.wait [#allocation3], 256  }
   0xf   :  { %337 = vsyncadd [#allocation3], 4294967040 }
  0x10   :  { %338 = dma.done.wait [#allocation6], 384  }
  0x11   :  { %339 = vsyncadd [#allocation6], 4294966912 }
  0x12   :  { %340 = dma.done.wait [#allocation9], 64  }
  0x13   :  { %341 = vsyncadd [#allocation9], 4294967232  ;;  %v76_v0 = vld [vmem:[#allocation2] sm:$0xff]  ;;  %v77_v1 = vld [vmem:[#allocation2 + $0x8] sm:$0xff]  ;;  %vm112_vm0 = vcmask 1041408   ;;  %vm114_vm1 = vcmask 1045508  }
  0x14   :  { %v80_v2 = vld [vmem:[#allocation7] sm:$0xff]  ;;  %vm116_vm2 = vcmask 1043456   ;;  %78 = vst [vmem:[#allocation10] sm:$0xff] %v76_v0  ;;  %v81_v7 = vld [vmem:[#allocation7 + $0x8] sm:$0xff]  ;;  %v135_v12 = vld [vmem:[#allocation5] sm:$0xff]  ;;  %s350_s2 = smov [#allocation10]  }
  0x15   :  { %v84_v3 = vperm.slane %v80_v2, 0  ;;  %v85_v4 = vperm.slane %v80_v2, 1  ;;  %v86_v5 = vperm.slane %v80_v2, 2  ;;  %v87_v6 = vperm.slane %v80_v2, 3  ;;  %79 = vst [vmem:[#allocation10 + $0x8] sm:$0xff] %v77_v1  ;;  %s156_s3 = sshll.u32 %s350_s2, 4  ;;  %s157_s3 = int_to_ptr.vmem [resolvable:$true] %s156_s3 }
  0x16   :  { %v88_v8 = vperm.slane %v80_v2, 4  ;;  %v89_v9 = vperm.slane %v80_v2, 5  ;;  %v90_v10 = vperm.slane %v80_v2, 6  ;;  %v91_v11 = vperm.slane %v80_v2, 7  ;;  %136 = vst [vmem:[#allocation11] sm:$0xff] %v135_v12  ;;  %s158_s13 = sshll.u32 %s419_s4, 4  ;;  %s159_s13 = int_to_ptr.hbm [resolvable:$true] %s158_s13 }
  0x17   :  { %v100_v13 = vrot.slane %v85_v4, 6  ;;  %v101_v14 = vrot.slane %v86_v5, 4  ;;  %v102_v15 = vrot.slane %v87_v6, 2  ;;  %v92_v16 = vperm.slane %v81_v7, 0  ;;  %v137_v29 = vld [vmem:[#allocation8] sm:$0xf] }
  0x18   :  { %v103_v17 = vrot.slane %v89_v9, 6  ;;  %v104_v18 = vrot.slane %v90_v10, 4  ;;  %v105_v19 = vrot.slane %v91_v11, 2  ;;  %v93_v20 = vperm.slane %v81_v7, 1  ;;  %s351_s14 = smov [#allocation11]   ;;  %s169_s18 = sshll.u32 %s420_s5, 4  ;;  %s170_s18 = int_to_ptr.hbm [resolvable:$true] %s169_s18 }
  0x19   :  { %v113_v21 = vsel %vm112_vm0, %v84_v3, %v100_v13  ;;  %v115_v22 = vsel %vm114_vm1, %v101_v14, %v102_v15  ;;  %v94_v23 = vperm.slane %v81_v7, 2  ;;  %v95_v24 = vperm.slane %v81_v7, 3  ;;  %s167_s15 = sshll.u32 %s351_s14, 4  ;;  %s168_s15 = int_to_ptr.vmem [resolvable:$true] %s167_s15 }
  0x1a   :  { %v117_v25 = vsel %vm116_vm2, %v113_v21, %v115_v22  ;;  %v118_v26 = vsel %vm112_vm0, %v88_v8, %v103_v17  ;;  %v119_v27 = vsel %vm114_vm1, %v104_v18, %v105_v19  ;;  %v106_v28 = vrot.slane %v93_v20, 6 }
  0x1b   :  { %131 = vst [vmem:[#allocation10 + $0x10] sm:$0xff] %v117_v25  ;;  %v120_v30 = vsel %vm116_vm2, %v118_v26, %v119_v27  ;;  %v107_v31 = vrot.slane %v94_v23, 4  ;;  %v108_v32 = vrot.slane %v95_v24, 2  ;;  %v96_v33 = vperm.slane %v81_v7, 4 }
  0x1c   :  { %132 = vst [vmem:[#allocation10 + $0x18] sm:$0xff] %v120_v30  ;;  %v121_v34 = vsel %vm112_vm0, %v92_v16, %v106_v28  ;;  %v97_v35 = vperm.slane %v81_v7, 5  ;;  %v98_v36 = vperm.slane %v81_v7, 6  ;;  %v99_v37 = vperm.slane %v81_v7, 7 }
  0x1d   :  { %v122_v38 = vsel %vm114_vm1, %v107_v31, %v108_v32  ;;  %v139_v39 = vperm.slane %v137_v29, 0  ;;  %v140_v40 = vperm.slane %v137_v29, 1  ;;  %v141_v41 = vperm.slane %v137_v29, 2 }
  0x1e   :  { %v123_v42 = vsel %vm116_vm2, %v121_v34, %v122_v38  ;;  %v109_v43 = vrot.slane %v97_v35, 6  ;;  %v110_v44 = vrot.slane %v98_v36, 4  ;;  %v111_v45 = vrot.slane %v99_v37, 2 }
  0x1f   :  { %133 = vst [vmem:[#allocation10 + $0x20] sm:$0xff] %v123_v42  ;;  %v142_v46 = vperm.slane %v137_v29, 3  ;;  %v143_v47 = vrot.slane %v140_v40, 6  ;;  %v144_v48 = vrot.slane %v141_v41, 4 }
  0x20   :  { %v124_v49 = vsel %vm112_vm0, %v96_v33, %v109_v43  ;;  %v125_v50 = vsel %vm114_vm1, %v110_v44, %v111_v45 }
  0x21   :  { %v126_v51 = vsel %vm116_vm2, %v124_v49, %v125_v50  ;;  %v145_v52 = vrot.slane %v142_v46, 2  ;;  %v146_v53 = vsel %vm112_vm0, %v139_v39, %v143_v47 }
  0x22   :  { %134 = vst [vmem:[#allocation10 + $0x28] sm:$0xff] %v126_v51 }
  0x23   :  { %v147_v54 = vsel %vm114_vm1, %v144_v48, %v145_v52  ;;  %161 = dma.vmem_to_hbm [thread:$0]  %s157_s3, 768, %s159_s13, [#allocation4]  }
  0x24   :  { %v148_v55 = vsel %vm116_vm2, %v146_v53, %v147_v54 }
  0x25   :  { %150 = vst [vmem:[#allocation11 + $0x8] sm:$0xff] %v148_v55 }
  0x26   :  { %172 = dma.vmem_to_hbm [thread:$0]  %s168_s15, 256, %s170_s18, [#allocation12]  }
  0x27   :  { %342 = dma.done.wait [#allocation4], 768  }
  0x28   :  { %343 = vsyncadd [#allocation4], 4294966528 }
  0x29   :  { %344 = dma.done.wait [#allocation12], 256  }
  0x2a   :  { %345 = vsyncadd [#allocation12], 4294967040 }
  0x2b   :  { %181 = vsyncpa [#allocation3], 1 }
  0x2c   :  { %182 = vsyncpa [#allocation6], 1 }
  0x2d   :  { %183 = vsyncpa [#allocation9], 1 }
  0x2e   :  { %184 = vsyncpa [#allocation4], 1 }
  0x2f   :  { %185 = vsyncpa [#allocation12], 1 }

</bundles_post_ra>
